<compile_context>
chip_gen: v7x
topology: tpu7x:2x2x1
jax: 0.10.0
libtpu: 0.0.40
codegen_flags: <defaults>
</compile_context>

<pallas_src>
import math

import jax
import jax.numpy as jnp
from jax.experimental import pallas as pl
from jax.experimental.pallas import tpu as pltpu


_LANE = 128
_SUBLANE = 8
_TARGET_BLOCK_ELEMS = 512 * 1024        # ~2 MiB per input block at f32


def _pick_block(R, C):
    """Choose a legal (sublane, lane) block of roughly _TARGET_BLOCK_ELEMS."""
    max_bc = 512 * _LANE                       # 65536 lanes max per block row
    bc = C if C <= max_bc else max_bc          # full dim, or a multiple of 128
    row_budget = max(1, _TARGET_BLOCK_ELEMS // bc)
    if R <= row_budget:
        br = R                                 # full dim -> always legal
    else:
        br = max(_SUBLANE, (row_budget // _SUBLANE) * _SUBLANE)
    return br, bc


def _make_dice_kernel(R, C, br, bc, grid_r, grid_c):
    mask_rows = (R % br) != 0
    mask_cols = (C % bc) != 0

    def kernel(p_ref, t_ref, out_ref, acc_num_ref, acc_den_ref):
        i = pl.program_id(0)
        j = pl.program_id(1)

        # Zero the resident VMEM accumulators on the first grid step.
        @pl.when(jnp.logical_and(i == 0, j == 0))
        def _init():
            acc_num_ref[...] = jnp.zeros_like(acc_num_ref)
            acc_den_ref[...] = jnp.zeros_like(acc_den_ref)

        p = p_ref[...].astype(jnp.float32)
        t = t_ref[...].astype(jnp.float32)

        # Mask ragged edge tiles (Pallas does not zero-fill OOB block reads).
        if mask_rows or mask_cols:
            valid = None
            if mask_rows:
                row = jax.lax.broadcasted_iota(jnp.int32, (br, bc), 0)
                valid = (i * br + row) < R
            if mask_cols:
                col = jax.lax.broadcasted_iota(jnp.int32, (br, bc), 1)
                vcol = (j * bc + col) < C
                valid = vcol if valid is None else jnp.logical_and(valid, vcol)
            zero = jnp.float32(0.0)
            p = jnp.where(valid, p, zero)
            t = jnp.where(valid, t, zero)

        # Elementwise accumulation only (stays on the VPU, pipelines cleanly).
        acc_num_ref[...] += p * t
        acc_den_ref[...] += p + t

        # Single cross-lane/sublane reduce + SMEM store at the very end.
        @pl.when(jnp.logical_and(i == grid_r - 1, j == grid_c - 1))
        def _finalize():
            out_ref[0, 0] = jnp.sum(acc_num_ref[...])
            out_ref[0, 1] = jnp.sum(acc_den_ref[...])

    return kernel


def binary_dice_sums(predict, target):
    """Returns (num, den) exactly like BinaryDiceLoss.forward."""
    assert predict.shape[0] == target.shape[0], \
        "predict & target batch size don't match"
    n = predict.shape[0]
    total = math.prod(predict.shape)
    assert math.prod(target.shape) == total, "predict & target sizes differ"

    # Sublane/lane-dense view when possible; otherwise the (N, D) view.
    # Both are free (contiguous, row-major) reshapes — no padding copies.
    if total % _LANE == 0:
        R, C = total // _LANE, _LANE
    else:
        R, C = n, total // n
    p2 = predict.reshape(R, C)
    t2 = target.reshape(R, C)

    br, bc = _pick_block(R, C)
    grid_r = pl.cdiv(R, br)
    grid_c = pl.cdiv(C, bc)

    in_spec = pl.BlockSpec((br, bc), lambda i, j: (i, j))
    out_spec = pl.BlockSpec((1, 2), lambda i, j: (0, 0),
                            memory_space=pltpu.SMEM)

    # 2 inputs x 2 pipeline buffers + 2 f32 accumulators, plus headroom.
    in_block_bytes = br * bc * (p2.dtype.itemsize + t2.dtype.itemsize)
    acc_bytes = 2 * br * bc * 4
    vmem_needed = 2 * in_block_bytes + acc_bytes + (2 << 20)
    vmem_limit = int(min(48 << 20, max(32 << 20, vmem_needed)))

    sums = pl.pallas_call(
        _make_dice_kernel(R, C, br, bc, grid_r, grid_c),
        out_shape=jax.ShapeDtypeStruct((1, 2), jnp.float32),
        grid_spec=pltpu.PrefetchScalarGridSpec(
            num_scalar_prefetch=0,
            grid=(grid_r, grid_c),
            in_specs=[in_spec, in_spec],
            out_specs=out_spec,
            scratch_shapes=[pltpu.VMEM((br, bc), jnp.float32),
                            pltpu.VMEM((br, bc), jnp.float32)],
        ),
        compiler_params=pltpu.CompilerParams(
            dimension_semantics=("arbitrary", "arbitrary"),
            vmem_limit_bytes=vmem_limit,
        ),
    )(p2, t2)

    return sums[0, 0], sums[0, 1]


if __name__ == "__main__":
    key = jax.random.PRNGKey(0)
    k1, k2 = jax.random.split(key)

    # Small NCHW shapes consistent with a segmentation-style use of the loss.
    x_shape = (2, 4, 16, 16)
    predict = jax.nn.sigmoid(jax.random.normal(k1, x_shape, dtype=jnp.float32))
    target = (jax.random.uniform(k2, x_shape) > 0.5).astype(jnp.float32)

    dice_sums = jax.jit(binary_dice_sums)
    num, den = dice_sums(predict, target)
    num, den = jax.block_until_ready((num, den))

    # Pure-JAX reference (same semantics as the PyTorch forward).
    ref_num = jnp.sum(predict.reshape(x_shape[0], -1) *
                      target.reshape(x_shape[0], -1))
    ref_den = jnp.sum(predict.reshape(x_shape[0], -1) +
                      target.reshape(x_shape[0], -1))
    assert jnp.allclose(num, ref_num, rtol=1e-5, atol=1e-5)
    assert jnp.allclose(den, ref_den, rtol=1e-5, atol=1e-5)

    print("KERNEL_OK")
</pallas_src>

<mosaic_0001>
module attributes {stable_mosaic.version = 11 : i64} {
  func.func @kernel(%arg0: i32, %arg1: i32, %arg2: memref<16x128xf32, #tpu.memory_space<vmem>>, %arg3: memref<16x128xf32, #tpu.memory_space<vmem>>, %arg4: memref<1x2xf32, #tpu.memory_space<smem>>, %arg5: memref<16x128xf32, #tpu.memory_space<vmem>>, %arg6: memref<16x128xf32, #tpu.memory_space<vmem>>) attributes {dimension_semantics = [#tpu.dimension_semantics<arbitrary>, #tpu.dimension_semantics<arbitrary>], iteration_bounds = array<i64: 1, 1>, scalar_prefetch = 0 : i64, scratch_operands = 2 : i64, tpu.core_type = #tpu.core_type<tc>, window_params = [{transform_indices = @transform_0, window_bounds = array<i64: 16, 128>}, {transform_indices = @transform_1, window_bounds = array<i64: 16, 128>}, {transform_indices = @transform_2, window_bounds = array<i64: 1, 2>}]} {
    %c0_i32 = arith.constant 0 : i32
    %0 = arith.cmpi eq, %arg0, %c0_i32 : i32
    %c0_i32_0 = arith.constant 0 : i32
    %1 = arith.cmpi eq, %arg1, %c0_i32_0 : i32
    %2 = arith.andi %0, %1 : i1
    %3 = arith.extui %2 : i1 to i32
    %c0_i32_1 = arith.constant 0 : i32
    %4 = arith.cmpi ne, %3, %c0_i32_1 : i32
    scf.if %4 {
      %cst = arith.constant 0.000000e+00 : f32
      %20 = vector.broadcast %cst : f32 to vector<16x128xf32>
      %c0_16 = arith.constant 0 : index
      %c0_17 = arith.constant 0 : index
      %21 = vector.load %arg5[%c0_16, %c0_17] : memref<16x128xf32, #tpu.memory_space<vmem>>, vector<16x128xf32>
      tpu.vector_store %arg5[%c0_16, %c0_17], %20 {strides = array<i32>} : memref<16x128xf32, #tpu.memory_space<vmem>>, vector<16x128xf32>,
      %cst_18 = arith.constant 0.000000e+00 : f32
      %22 = vector.broadcast %cst_18 : f32 to vector<16x128xf32>
      %c0_19 = arith.constant 0 : index
      %c0_20 = arith.constant 0 : index
      %23 = vector.load %arg6[%c0_19, %c0_20] : memref<16x128xf32, #tpu.memory_space<vmem>>, vector<16x128xf32>
      tpu.vector_store %arg6[%c0_19, %c0_20], %22 {strides = array<i32>} : memref<16x128xf32, #tpu.memory_space<vmem>>, vector<16x128xf32>,
    } else {
    }
    %c0 = arith.constant 0 : index
    %c0_2 = arith.constant 0 : index
    %5 = vector.load %arg2[%c0, %c0_2] : memref<16x128xf32, #tpu.memory_space<vmem>>, vector<16x128xf32>
    %c0_3 = arith.constant 0 : index
    %c0_4 = arith.constant 0 : index
    %6 = vector.load %arg3[%c0_3, %c0_4] : memref<16x128xf32, #tpu.memory_space<vmem>>, vector<16x128xf32>
    %c0_5 = arith.constant 0 : index
    %c0_6 = arith.constant 0 : index
    %7 = vector.load %arg5[%c0_5, %c0_6] : memref<16x128xf32, #tpu.memory_space<vmem>>, vector<16x128xf32>
    %8 = arith.mulf %5, %6 : vector<16x128xf32>
    %9 = arith.addf %7, %8 : vector<16x128xf32>
    %c0_7 = arith.constant 0 : index
    %c0_8 = arith.constant 0 : index
    %10 = vector.load %arg5[%c0_7, %c0_8] : memref<16x128xf32, #tpu.memory_space<vmem>>, vector<16x128xf32>
    tpu.vector_store %arg5[%c0_7, %c0_8], %9 {strides = array<i32>} : memref<16x128xf32, #tpu.memory_space<vmem>>, vector<16x128xf32>,
    %c0_9 = arith.constant 0 : index
    %c0_10 = arith.constant 0 : index
    %11 = vector.load %arg6[%c0_9, %c0_10] : memref<16x128xf32, #tpu.memory_space<vmem>>, vector<16x128xf32>
    %12 = arith.addf %5, %6 : vector<16x128xf32>
    %13 = arith.addf %11, %12 : vector<16x128xf32>
    %c0_11 = arith.constant 0 : index
    %c0_12 = arith.constant 0 : index
    %14 = vector.load %arg6[%c0_11, %c0_12] : memref<16x128xf32, #tpu.memory_space<vmem>>, vector<16x128xf32>
    tpu.vector_store %arg6[%c0_11, %c0_12], %13 {strides = array<i32>} : memref<16x128xf32, #tpu.memory_space<vmem>>, vector<16x128xf32>,
    %c0_i32_13 = arith.constant 0 : i32
    %15 = arith.cmpi eq, %arg0, %c0_i32_13 : i32
    %c0_i32_14 = arith.constant 0 : i32
    %16 = arith.cmpi eq, %arg1, %c0_i32_14 : i32
    %17 = arith.andi %15, %16 : i1
    %18 = arith.extui %17 : i1 to i32
    %c0_i32_15 = arith.constant 0 : i32
    %19 = arith.cmpi ne, %18, %c0_i32_15 : i32
    scf.if %19 {
      %c0_16 = arith.constant 0 : index
      %c0_17 = arith.constant 0 : index
      %20 = vector.load %arg5[%c0_16, %c0_17] : memref<16x128xf32, #tpu.memory_space<vmem>>, vector<16x128xf32>
      %21 = vector.shape_cast %20 : vector<16x128xf32> to vector<1x16x128xf32>
      %cst = arith.constant dense<0.000000e+00> : vector<1xf32>
      %22 = vector.multi_reduction <add>, %21, %cst [1, 2] : vector<1x16x128xf32> to vector<1xf32>
      %23 = vector.shape_cast %22 : vector<1xf32> to vector<1x1x1xf32>
      %24 = vector.extract %23[0, 0, 0] : f32 from vector<1x1x1xf32>
      %c0_18 = arith.constant 0 : index
      %c0_19 = arith.constant 0 : index
      %25 = memref.load %arg4[%c0_18, %c0_19] : memref<1x2xf32, #tpu.memory_space<smem>>
      memref.store %24, %arg4[%c0_18, %c0_19] : memref<1x2xf32, #tpu.memory_space<smem>>
      %c0_20 = arith.constant 0 : index
      %c0_21 = arith.constant 0 : index
      %26 = vector.load %arg6[%c0_20, %c0_21] : memref<16x128xf32, #tpu.memory_space<vmem>>, vector<16x128xf32>
      %27 = vector.shape_cast %26 : vector<16x128xf32> to vector<1x16x128xf32>
      %cst_22 = arith.constant dense<0.000000e+00> : vector<1xf32>
      %28 = vector.multi_reduction <add>, %27, %cst_22 [1, 2] : vector<1x16x128xf32> to vector<1xf32>
      %29 = vector.shape_cast %28 : vector<1xf32> to vector<1x1x1xf32>
      %30 = vector.extract %29[0, 0, 0] : f32 from vector<1x1x1xf32>
      %c0_23 = arith.constant 0 : index
      %c1 = arith.constant 1 : index
      %31 = memref.load %arg4[%c0_23, %c1] : memref<1x2xf32, #tpu.memory_space<smem>>
      memref.store %30, %arg4[%c0_23, %c1] : memref<1x2xf32, #tpu.memory_space<smem>>
    } else {
    }
    return
  }
  func.func @transform_0(%arg0: i32, %arg1: i32) -> (i32, i32) {
    %c0_i32 = arith.constant 0 : i32
    return %arg0, %arg1 : i32, i32
  }
  func.func @transform_1(%arg0: i32, %arg1: i32) -> (i32, i32) {
    %c0_i32 = arith.constant 0 : i32
    return %arg0, %arg1 : i32, i32
  }
  func.func @transform_2(%arg0: i32, %arg1: i32) -> (i32, i32) {
    %c0_i32 = arith.constant 0 : i32
    %c0_i32_0 = arith.constant 0 : i32
    %c0_i32_1 = arith.constant 0 : i32
    return %c0_i32, %c0_i32_0 : i32, i32
  }
}

</mosaic_0001>

<bundles_post_ra>
// kernel: binary_dice_sums.1
= control target key start
LH: loop header
LB: loop body
LE: loop exit
PB: predicated region body
PF: predicated region fallthrough
CT: control target
= control target key end

     0   :  { %s137_s0 = inlined_call_operand.vmem [shape: f32[16,128], index: 0, kind: input, shape index: {}]   ;;  %s138_s1 = inlined_call_operand.vmem [shape: f32[16,128], index: 1, kind: input, shape index: {}]   ;;  %s139_s2 = inlined_call_operand.vmem [shape: f32[1,2], index: 2, kind: output, shape index: {}]  }
   0x1   :  { %v22_v0 = vld [vmem:[%s137_s0] sm:$0xff]  ;;  %v23_v1 = vld [vmem:[%s137_s0 + $0x8] sm:$0xff] }
   0x2   :  { %v24_v2 = vld [vmem:[%s138_s1] sm:$0xff]  ;;  %v25_v3 = vld [vmem:[%s138_s1 + $0x8] sm:$0xff] }
   0x3   :  { %v28_v4 = vmul.f32 %v24_v2, %v22_v0 }
   0x4   :  { %7 = vsyncpa [#allocation5], 0  ;;  %v29_v5 = vmul.f32 %v25_v3, %v23_v1  ;;  %v36_v6 = vadd.f32 %v24_v2, %v22_v0  ;;  %v37_v7 = vadd.f32 %v25_v3, %v23_v1  ;;  %s78_s18 = sshll.u32 %s139_s2, 4  ;;  %s79_s18 = int_to_ptr.vmem [resolvable:$true] %s78_s18 }
   0x5   :  { %s92_s20 = scalar_lea.vmem %s79_s18, 16  ;;  %p97_p1 = scmp.lt.s32.totalorder %s79_s18, %s79_s18 }
   0x6   :  { %v46_v8 = vadd.f32 %v29_v5, %v28_v4  ;;  %v60_v9 = vadd.f32 %v37_v7, %v36_v6  ;;  %p93_p0 = scmp.ne.s32.totalorder %s79_s18, %s92_s20  ;;  %p98_p2 = scmp.lt.s32.totalorder %s92_s20, %s92_s20 }
   0x8   :  { %47 = vadd.xlane.f32.xlu0 %v46_v8  ;;  %p99_p3 = por %p98_p2, %p97_p1 }
   0xa   :  { %p100_p4 = pnand %p99_p3, %p93_p0 }
   0xc   :  { %61 = vadd.xlane.f32.xlu0 %v60_v9 }
  0x95   :  { %v48_v10 = vpop.xlane.xlu0 %47 }
  0x96   :  { %v49_v11 = vrot.slane %v48_v10, 4 }
  0x98   :  { %v50_v12 = vadd.f32 %v49_v11, %v48_v10 }
  0x99   :  { %v62_v13 = vpop.xlane.xlu0 %61 }
  0x9a   :  { %v51_v14 = vrot.slane %v50_v12, 2  ;;  %v63_v15 = vrot.slane %v62_v13, 4 }
  0x9c   :  { %v64_v16 = vadd.f32 %v63_v15, %v62_v13  ;;  %v52_v17 = vadd.f32 %v51_v14, %v50_v12 }
  0x9e   :  { %v65_v18 = vrot.slane %v64_v16, 2  ;;  %v53_v19 = vrot.slane %v52_v17, 1 }
  0xa0   :  { %v66_v20 = vadd.f32 %v65_v18, %v64_v16  ;;  %v54_v21 = vadd.f32 %v53_v19, %v52_v17 }
  0xa2   :  { %87 = vpush %v54_v21  ;;  %v67_v22 = vrot.slane %v66_v20, 1 }
  0xa4   :  { %v68_v23 = vadd.f32 %v67_v22, %v66_v20 }
  0xa6   :  { %89 = vpush %v68_v23 }
  0xd3   :  { %s88_s0 = spop %87 }
  0xd4   :  { %57 = sst [smem:[#allocation4]] %s88_s0 }
  0xd7   :  { %s90_s19 = spop %89 }
  0xd8   :  { %71 = sst [smem:[#allocation4 + $0x1]] %s90_s19 }
  0xd9   :  { %103 = shalt.err (!%p100_p4)
}
  0xda   :  { %s106_s21 = smov [#allocation4]  }
  0xdb   :  { %81 = dma.smem_to_vmem %s106_s21, 16, %s79_s18, [#allocation5]  }
  0xdc   :  { %104 = dma.done.wait [#allocation5], 16  }
  0xdd   :  { %105 = vsyncadd [#allocation5], 4294967280 }
  0xde   :  { %85 = sfence }
  0xdf   :  { %86 = vsyncpa [#allocation5], 1 }

</bundles_post_ra>
